<compile_context>
chip_gen: v6e
topology: v6e:2x2x1
jax: 0.10.0
libtpu: 0.0.40
codegen_flags: <defaults>
</compile_context>

<pallas_src>
import jax
import jax.numpy as jnp
from jax.experimental import pallas as pl
from jax.experimental.pallas import tpu as pltpu


IN0, OUT0 = 96, 72
IN1, OUT1 = 72, 12
IN2, OUT2 = 12, 3
OUT_TOTAL = OUT0 + OUT1 + OUT2          # 87
LANES = 128                             # lane-dense padded width


def _cat_linear_kernel(x_ref, w_ref, out_ref):
    """Single bias-folded composite matmul; concat is baked into column placement."""
    out_ref[...] = jnp.dot(x_ref[...], w_ref[...],
                           preferred_element_type=jnp.float32)   # one MXU push, one unmasked vst


def pack_params(w0, b0, w1, b1, w2, b2):
    """Compose the affine cascade host-side into one zero-padded (128,128) matrix.

    Weights are stored as (in, out); biases as (out,).  Row 96 is the bias row
    (activated by the augmentation lane in x); columns 87..127 stay exactly zero.
    """
    w0 = jnp.asarray(w0, jnp.float32); b0 = jnp.asarray(b0, jnp.float32)
    w1 = jnp.asarray(w1, jnp.float32); b1 = jnp.asarray(b1, jnp.float32)
    w2 = jnp.asarray(w2, jnp.float32); b2 = jnp.asarray(b2, jnp.float32)

    c0_w, c0_b = w0, b0                               # (96,72), (72,)
    c1_w, c1_b = w0 @ w1, b0 @ w1 + b1                # (96,12), (12,)
    c2_w, c2_b = c1_w @ w2, c1_b @ w2 + b2            # (96, 3), (3,)

    p = jnp.zeros((LANES, LANES), jnp.float32)
    p = p.at[:IN0, :OUT0].set(c0_w)
    p = p.at[IN0, :OUT0].set(c0_b)
    p = p.at[:IN0, OUT0:OUT0 + OUT1].set(c1_w)
    p = p.at[IN0, OUT0:OUT0 + OUT1].set(c1_b)
    p = p.at[:IN0, OUT0 + OUT1:OUT_TOTAL].set(c2_w)
    p = p.at[IN0, OUT0 + OUT1:OUT_TOTAL].set(c2_b)
    return p


def cat_linear(x, packed_params):
    """x: (B, 96) f32; packed_params: (128, 128) f32 from pack_params()."""
    B = x.shape[0]
    Bp = max(8, ((B + 7) // 8) * 8)       # fill sublanes; min one vreg row block

    x_pad = jnp.zeros((Bp, LANES), jnp.float32)
    x_pad = x_pad.at[:B, :IN0].set(x.astype(jnp.float32))
    x_pad = x_pad.at[:B, IN0].set(1.0)    # aug lane only on real rows -> padded rows output 0

    vmem = pl.BlockSpec(memory_space=pltpu.MemorySpace.VMEM)
    cost = pl.CostEstimate(
        flops=2 * Bp * LANES * LANES,
        transcendentals=0,
        bytes_accessed=LANES * LANES * 4 + 2 * Bp * LANES * 4,
    )
    out = pl.pallas_call(
        _cat_linear_kernel,
        out_shape=jax.ShapeDtypeStruct((Bp, LANES), jnp.float32),
        in_specs=[vmem, vmem],
        out_specs=vmem,
        cost_estimate=cost,
    )(x_pad, packed_params)
    return out[:B, :OUT_TOTAL]


def _init_linear(key, fan_in, fan_out):
    """Deterministic PyTorch-style Linear init: U(-1/sqrt(fan_in), 1/sqrt(fan_in))."""
    kw, kb = jax.random.split(key)
    bound = 1.0 / (fan_in ** 0.5)
    w = jax.random.uniform(kw, (fan_in, fan_out), jnp.float32, -bound, bound)
    b = jax.random.uniform(kb, (fan_out,), jnp.float32, -bound, bound)
    return w, b


if __name__ == "__main__":
    key = jax.random.PRNGKey(0)
    kx, k0, k1, k2 = jax.random.split(key, 4)

    # Input: (1, 96) as in the PyTorch module (wrapper also supports B > 1).
    x = jax.random.normal(kx, (1, IN0), jnp.float32)

    # Parameters (Linear(96,72), Linear(72,12), Linear(12,3)), stored as (in, out).
    w0, b0 = _init_linear(k0, IN0, OUT0)
    w1, b1 = _init_linear(k1, IN1, OUT1)
    w2, b2 = _init_linear(k2, IN2, OUT2)

    packed = pack_params(w0, b0, w1, b1, w2, b2)   # composed once; single 64 KiB DMA per call

    # jit the wrapper so the pad / slice ops fuse around the tiny custom call.
    cat_linear_jit = jax.jit(cat_linear)
    out = cat_linear_jit(x, packed)
    out = jax.block_until_ready(out)

    # Reference check in plain JAX (sequential cascade interpretation).
    h0 = x @ w0 + b0
    h1 = h0 @ w1 + b1
    h2 = h1 @ w2 + b2
    ref = jnp.concatenate([h0, h1, h2], axis=1)
    assert out.shape == (1, OUT_TOTAL), out.shape
    err = float(jnp.max(jnp.abs(out - ref)))
    # Host-side composition vs sequential cascade differs only at ~1e-6 rounding level.
    assert jnp.allclose(out, ref, atol=1e-4, rtol=1e-4), err

    print("KERNEL_OK")
</pallas_src>

<mosaic_0001>
module attributes {stable_mosaic.version = 11 : i64} {
  func.func @_cat_linear_kernel(%arg0: memref<8x128xf32, #tpu.memory_space<vmem>>, %arg1: memref<128x128xf32, #tpu.memory_space<vmem>>, %arg2: memref<8x128xf32, #tpu.memory_space<vmem>>) attributes {dimension_semantics = [], scalar_prefetch = 0 : i64, scratch_operands = 0 : i64, tpu.core_type = #tpu.core_type<tc>} {
    %c0 = arith.constant 0 : index
    %c0_0 = arith.constant 0 : index
    %0 = vector.load %arg0[%c0, %c0_0] : memref<8x128xf32, #tpu.memory_space<vmem>>, vector<8x128xf32>
    %c0_1 = arith.constant 0 : index
    %c0_2 = arith.constant 0 : index
    %1 = vector.load %arg1[%c0_1, %c0_2] : memref<128x128xf32, #tpu.memory_space<vmem>>, vector<128x128xf32>
    %cst = arith.constant dense<0.000000e+00> : vector<8x128xf32>
    %2 = tpu.matmul %0, %1, %cst {dimension_numbers = #tpu.dot_dimension_numbers<[1], [0], [0], [1], [0, 0, 1, 1], [], []>} : vector<8x128xf32>, vector<128x128xf32>, vector<8x128xf32> -> vector<8x128xf32>
    %c0_3 = arith.constant 0 : index
    %c0_4 = arith.constant 0 : index
    %3 = vector.load %arg2[%c0_3, %c0_4] : memref<8x128xf32, #tpu.memory_space<vmem>>, vector<8x128xf32>
    tpu.vector_store %arg2[%c0_3, %c0_4], %2 {strides = array<i32>} : memref<8x128xf32, #tpu.memory_space<vmem>>, vector<8x128xf32>,
    return
  }
}

</mosaic_0001>

<bundles_post_ra>
// kernel: cat_linear.1
= control target key start
LH: loop header
LB: loop body
LE: loop exit
PB: predicated region body
PF: predicated region fallthrough
CT: control target
= control target key end

     0   :  { %7 = vsyncpa [#allocation3], 0  ;;  %s197_s9 = smov [#allocation2]   ;;  %s226_s0 = inlined_call_operand.vmem [shape: f32[8,128], index: 0, kind: input, shape index: {}]   ;;  %s227_s1 = inlined_call_operand.hbm [shape: f32[128,128], index: 1, kind: input, shape index: {}]   ;;  %s228_s2 = inlined_call_operand.vmem [shape: f32[8,128], index: 2, kind: output, shape index: {}]  }
   0x1   :  { %s15_s10 = sshll.u32 %s197_s9, 4  ;;  %s16_s10 = int_to_ptr.vmem [resolvable:$true] %s15_s10 }
   0x2   :  { %s183_s11 = scalar_lea.vmem %s16_s10, 2048  ;;  %p188_p1 = scmp.lt.s32.totalorder %s16_s10, %s16_s10 }
   0x3   :  { %p184_p0 = scmp.ne.s32.totalorder %s16_s10, %s183_s11  ;;  %p189_p2 = scmp.lt.s32.totalorder %s183_s11, %s183_s11 }
   0x5   :  { %p190_p3 = por %p189_p2, %p188_p1 }
   0x7   :  { %p191_p4 = pnand %p190_p3, %p184_p0 }
   0x9   :  { %194 = shalt.err (!%p191_p4)
}
   0xa   :  { %s198_s12 = smov 128   ;;  %s199_s13 = smov 8  }
   0xb   :  { %21 = dma.hbm_to_vmem [thread:$0]  %s227_s1, 2048, %s16_s10, [#allocation3], %s198_s12, %s198_s12, %s199_s13  }
   0xc   :  { %195 = dma.done.wait [#allocation3], 2048  }
   0xd   :  { %196 = vsyncadd [#allocation3], 4294965248  ;;  %v200_v0 = vmov 0.0   ;;  %vm201_vm0 = vmmov 0   ;;  %v41_v1 = vld [vmem:[#allocation2 + $0x78] sm:$0xff]  ;;  %v40_v2 = vld [vmem:[#allocation2 + $0x70] sm:$0xff] }
   0xe   :  { %135 = vmatprep.subr.mxu0 %v200_v0  ;;  %167 = vmatprep.mubr.msk.f32.mxu0 %vm201_vm0, %v200_v0  ;;  %v39_v3 = vld [vmem:[#allocation2 + $0x68] sm:$0xff]  ;;  %v38_v4 = vld [vmem:[#allocation2 + $0x60] sm:$0xff]  ;;  %v37_v5 = vld [vmem:[#allocation2 + $0x58] sm:$0xff] }
   0xf   :  { %136 = vmatpush3.msra.mxu0 %v41_v1  ;;  %v36_v6 = vld [vmem:[#allocation2 + $0x50] sm:$0xff]  ;;  %v35_v7 = vld [vmem:[#allocation2 + $0x48] sm:$0xff]  ;;  %v34_v8 = vld [vmem:[#allocation2 + $0x40] sm:$0xff] }
  0x10   :  { %137 = vmatprep.subr.mxu0 %v200_v0  ;;  %v33_v9 = vld [vmem:[#allocation2 + $0x38] sm:$0xff]  ;;  %v32_v10 = vld [vmem:[#allocation2 + $0x30] sm:$0xff]  ;;  %v31_v11 = vld [vmem:[#allocation2 + $0x28] sm:$0xff] }
  0x11   :  { %138 = vmatpush3.msra.mxu0 %v40_v2  ;;  %v30_v12 = vld [vmem:[#allocation2 + $0x20] sm:$0xff]  ;;  %v29_v13 = vld [vmem:[#allocation2 + $0x18] sm:$0xff]  ;;  %v28_v14 = vld [vmem:[#allocation2 + $0x10] sm:$0xff] }
  0x12   :  { %139 = vmatprep.subr.mxu0 %v200_v0  ;;  %v27_v15 = vld [vmem:[#allocation2 + $0x8] sm:$0xff]  ;;  %v26_v16 = vld [vmem:[#allocation2] sm:$0xff] }
  0x13   :  { %140 = vmatpush3.msra.mxu0 %v39_v3  ;;  %v25_v17 = vld [vmem:[%s226_s0] sm:$0xff] }
  0x14   :  { %141 = vmatprep.subr.mxu0 %v200_v0 }
  0x15   :  { %142 = vmatpush3.msra.mxu0 %v38_v4 }
  0x16   :  { %143 = vmatprep.subr.mxu0 %v200_v0 }
  0x17   :  { %144 = vmatpush3.msra.mxu0 %v37_v5 }
  0x18   :  { %145 = vmatprep.subr.mxu0 %v200_v0 }
  0x19   :  { %146 = vmatpush3.msra.mxu0 %v36_v6 }
  0x1a   :  { %147 = vmatprep.subr.mxu0 %v200_v0 }
  0x1b   :  { %148 = vmatpush3.msra.mxu0 %v35_v7 }
  0x1c   :  { %149 = vmatprep.subr.mxu0 %v200_v0 }
  0x1d   :  { %150 = vmatpush3.msra.mxu0 %v34_v8 }
  0x1e   :  { %151 = vmatprep.subr.mxu0 %v200_v0 }
  0x1f   :  { %152 = vmatpush3.msra.mxu0 %v33_v9 }
  0x20   :  { %153 = vmatprep.subr.mxu0 %v200_v0 }
  0x21   :  { %154 = vmatpush3.msra.mxu0 %v32_v10 }
  0x22   :  { %155 = vmatprep.subr.mxu0 %v200_v0 }
  0x23   :  { %156 = vmatpush3.msra.mxu0 %v31_v11 }
  0x24   :  { %157 = vmatprep.subr.mxu0 %v200_v0 }
  0x25   :  { %158 = vmatpush3.msra.mxu0 %v30_v12 }
  0x26   :  { %159 = vmatprep.subr.mxu0 %v200_v0 }
  0x27   :  { %160 = vmatpush3.msra.mxu0 %v29_v13 }
  0x28   :  { %161 = vmatprep.subr.mxu0 %v200_v0 }
  0x29   :  { %162 = vmatpush3.msra.mxu0 %v28_v14 }
  0x2a   :  { %163 = vmatprep.subr.mxu0 %v200_v0 }
  0x2b   :  { %164 = vmatpush3.msra.mxu0 %v27_v15 }
  0x2c   :  { %165 = vmatprep.subr.mxu0 %v200_v0 }
  0x2d   :  { %166 = vmatpush3.msra.mxu0 %v26_v16 }
  0x2e   :  { %168 = vmatmul.mubr.f32.vlgmr.msra.gmra.mxu0 %v25_v17 }
  0xee   :  { %v108_v18 = vpop.f32.mrf.mxu0 }
  0xef   :  { %112 = vst [vmem:[%s228_s2] sm:$0xff] %v108_v18 }
  0xf0   :  { %v169_v19 = vpop.f32.mrf.mxu0 }
  0xf1   :  { %117 = vsyncpa [#allocation3], 1 }

</bundles_post_ra>
